<compile_context>
chip_gen: v5e
topology: v5e:2x2
jax: 0.10.0
libtpu: 0.0.40
codegen_flags: <defaults>
</compile_context>

<pallas_src>
import functools

import jax
import jax.numpy as jnp
from jax.experimental import pallas as pl
from jax.experimental.pallas import tpu as pltpu


# ----------------------------------------------------------------------------
# Fused kernel: one batch element per grid step
# ----------------------------------------------------------------------------
def _fused_kernel(xd_ref, w01_ref, w2_ref, w3_ref, p01_ref, p2_ref, p3_ref,
                  o_ref, pad_ref, *, Ho, Wo, K, Cout, Cmid):
    # xd_ref : (1, M, 4*Cin)        space-to-depth input, M = Ho*Wo
    # w01_ref: (4*Cin, Cout+Cmid)   [main 2x2/s2 | ext 2x2/s2] weights (BN folded)
    # w2_ref : (K*K, Cmid, Cmid)    3x3 conv taps (BN scale folded)
    # w3_ref : (Cmid, Cout)         1x1 conv weight (BN scale folded)
    # p01_ref: (2, 1, Cout+Cmid)    [shift, prelu alpha] for fused stage 0+1
    # p2_ref : (2, 1, Cmid)         [bn2 shift, alpha2]
    # p3_ref : (2, 1, Cout)         [bn3 shift, out alpha]
    # o_ref  : (1, M, Cout)
    # pad_ref: (Ho+2P, Wo+2P, Cmid) VMEM halo scratch
    M = Ho * Wo
    P = (K - 1) // 2
    xd = xd_ref[0]                                               # (M, 4*Cin)

    # ---- stage 0+1 fused: main 2x2/s2 conv AND ext 2x2/s2 conv, one matmul ----
    y01 = jnp.dot(xd, w01_ref[...], preferred_element_type=jnp.float32)
    y01 = y01 + p01_ref[0]
    y01 = jnp.where(y01 >= 0.0, y01, y01 * p01_ref[1])          # (M, Cout+Cmid)
    main = y01[:, :Cout]                                         # (M, Cout)
    y1 = y01[:, Cout:Cout + Cmid]                                # (M, Cmid)

    # ---- ext stage 2: 3x3 same-pad conv via VMEM halo scratch ----
    pad_ref[...] = jnp.zeros_like(pad_ref)
    pad_ref[P:P + Ho, P:P + Wo, :] = y1.reshape(Ho, Wo, Cmid)

    acc = None
    for kh in range(K):                                          # static unroll
        for kw in range(K):
            patch = pad_ref[kh:kh + Ho, kw:kw + Wo, :].reshape(M, Cmid)
            c = jnp.dot(patch, w2_ref[kh * K + kw],
                        preferred_element_type=jnp.float32)
            acc = c if acc is None else acc + c
    y2 = acc + p2_ref[0]
    y2 = jnp.where(y2 >= 0.0, y2, y2 * p2_ref[1])                # (M, Cmid)

    # ---- ext stage 3: 1x1 conv + BN + Dropout2d(eval=id) + residual + PReLU ----
    y3 = jnp.dot(y2, w3_ref[...], preferred_element_type=jnp.float32)
    y3 = y3 + p3_ref[0] + main
    o_ref[0] = jnp.where(y3 >= 0.0, y3, y3 * p3_ref[1]).astype(o_ref.dtype)


# ----------------------------------------------------------------------------
# Wrapper
# ----------------------------------------------------------------------------
def _fold_bn(gamma, beta, mean, var, eps=1e-5):
    scale = gamma / jnp.sqrt(var + eps)
    shift = beta - mean * scale
    return scale, shift


def downsampling_bottleneck_forward(x_nchw, p):
    """x_nchw: (N, Cin, H, W) float32 -> (N, Cout, H//2, W//2)."""
    N, Cin, H, W = x_nchw.shape
    K = p["w2"].shape[-1]
    P = (K - 1) // 2
    Cout = p["w_main"].shape[0]
    Cmid = p["w1"].shape[0]
    Ho, Wo = H // 2, W // 2
    M = Ho * Wo

    # Space-to-depth: both k=2/s=2 convs become one matmul over 4*Cin channels.
    # channel order after flatten: (kh, kw, cin)
    xd = (x_nchw.reshape(N, Cin, Ho, 2, Wo, 2)
                .transpose(0, 2, 4, 3, 5, 1)
                .reshape(N, M, 4 * Cin))

    sm, shm = _fold_bn(p["bnm_g"], p["bnm_b"], p["bnm_m"], p["bnm_v"])
    s1, sh1 = _fold_bn(p["bn1_g"], p["bn1_b"], p["bn1_m"], p["bn1_v"])
    s2, sh2 = _fold_bn(p["bn2_g"], p["bn2_b"], p["bn2_m"], p["bn2_v"])
    s3, sh3 = _fold_bn(p["bn3_g"], p["bn3_b"], p["bn3_m"], p["bn3_v"])

    # Fold BN scale into conv weights (eval mode) and reorder for matmul form.
    wm = jnp.transpose(p["w_main"], (2, 3, 1, 0)).reshape(4 * Cin, Cout) * sm[None, :]
    w1 = jnp.transpose(p["w1"], (2, 3, 1, 0)).reshape(4 * Cin, Cmid) * s1[None, :]
    w01 = jnp.concatenate([wm, w1], axis=1)                      # (4*Cin, Cout+Cmid)
    w2 = (jnp.transpose(p["w2"], (2, 3, 1, 0)).reshape(K * K, Cmid, Cmid)
          * s2[None, None, :])
    w3 = jnp.transpose(p["w3"].reshape(Cout, Cmid), (1, 0)) * s3[None, :]

    # Per-channel shift / PReLU slope packs.
    p01 = jnp.stack([jnp.concatenate([shm, sh1]),
                     jnp.concatenate([p["alpha_main"], p["alpha1"]])])[:, None, :]
    p2 = jnp.stack([sh2, p["alpha2"]])[:, None, :]               # (2, 1, Cmid)
    p3 = jnp.stack([sh3, p["alpha_out"]])[:, None, :]            # (2, 1, Cout)

    out = pl.pallas_call(
        functools.partial(_fused_kernel, Ho=Ho, Wo=Wo, K=K, Cout=Cout, Cmid=Cmid),
        out_shape=jax.ShapeDtypeStruct((N, M, Cout), jnp.float32),
        grid=(N,),
        in_specs=[
            pl.BlockSpec((1, M, 4 * Cin), lambda n: (n, 0, 0)),
            pl.BlockSpec((4 * Cin, Cout + Cmid), lambda n: (0, 0)),
            pl.BlockSpec((K * K, Cmid, Cmid), lambda n: (0, 0, 0)),
            pl.BlockSpec((Cmid, Cout), lambda n: (0, 0)),
            pl.BlockSpec((2, 1, Cout + Cmid), lambda n: (0, 0, 0)),
            pl.BlockSpec((2, 1, Cmid), lambda n: (0, 0, 0)),
            pl.BlockSpec((2, 1, Cout), lambda n: (0, 0, 0)),
        ],
        out_specs=pl.BlockSpec((1, M, Cout), lambda n: (n, 0, 0)),
        scratch_shapes=[pltpu.VMEM((Ho + 2 * P, Wo + 2 * P, Cmid), jnp.float32)],
        compiler_params=pltpu.CompilerParams(
            dimension_semantics=("parallel",),
            vmem_limit_bytes=32 * 1024 * 1024),
    )(xd, w01, w2, w3, p01, p2, p3)

    # (N, M, Cout) -> NCHW
    return out.reshape(N, Ho, Wo, Cout).transpose(0, 3, 1, 2)


# ----------------------------------------------------------------------------
# Pure-JAX reference (true conv semantics) for correctness checking
# ----------------------------------------------------------------------------
def reference_forward(x, p):
    def conv(x, w, stride=1, pad=0):
        return jax.lax.conv_general_dilated(
            x, w, window_strides=(stride, stride),
            padding=[(pad, pad), (pad, pad)],
            dimension_numbers=("NCHW", "OIHW", "NCHW"))

    def bn(y, g, b, m, v, eps=1e-5):
        c = lambda t: t.reshape(1, -1, 1, 1)
        return (y - c(m)) / jnp.sqrt(c(v) + eps) * c(g) + c(b)

    def prelu(y, a):
        return jnp.where(y >= 0.0, y, a.reshape(1, -1, 1, 1) * y)

    main = prelu(bn(conv(x, p["w_main"], stride=2),
                    p["bnm_g"], p["bnm_b"], p["bnm_m"], p["bnm_v"]),
                 p["alpha_main"])
    e = prelu(bn(conv(x, p["w1"], stride=2),
                 p["bn1_g"], p["bn1_b"], p["bn1_m"], p["bn1_v"]), p["alpha1"])
    e = prelu(bn(conv(e, p["w2"], stride=1, pad=1),
                 p["bn2_g"], p["bn2_b"], p["bn2_m"], p["bn2_v"]), p["alpha2"])
    e = bn(conv(e, p["w3"]), p["bn3_g"], p["bn3_b"], p["bn3_m"], p["bn3_v"])
    # Dropout2d(0.1) in eval mode -> identity
    return prelu(e + main, p["alpha_out"])


# ----------------------------------------------------------------------------
if __name__ == "__main__":
    # Module config: in_channels=16, inter_channels=8, out_channels=32.
    N, Cin, H, W = 2, 16, 16, 16
    Cmid, Cout = 8, 32

    key = jax.random.PRNGKey(0)
    ks = jax.random.split(key, 22)

    def nrm(i, shape, scale=0.1):
        return scale * jax.random.normal(ks[i], shape, jnp.float32)

    params = dict(
        # conv weights in PyTorch OIHW layout
        w_main=nrm(0, (Cout, Cin, 2, 2)),
        w1=nrm(1, (Cmid, Cin, 2, 2)),
        w2=nrm(2, (Cmid, Cmid, 3, 3)),
        w3=nrm(3, (Cout, Cmid, 1, 1)),
        # BatchNorm (eval mode): gamma, beta, running_mean, running_var
        bnm_g=1.0 + nrm(4, (Cout,)), bnm_b=nrm(5, (Cout,)),
        bnm_m=nrm(6, (Cout,)),
        bnm_v=1.0 + 0.1 * jax.random.uniform(ks[7], (Cout,), jnp.float32),
        bn1_g=1.0 + nrm(8, (Cmid,)), bn1_b=nrm(9, (Cmid,)),
        bn1_m=nrm(10, (Cmid,)),
        bn1_v=1.0 + 0.1 * jax.random.uniform(ks[11], (Cmid,), jnp.float32),
        bn2_g=1.0 + nrm(12, (Cmid,)), bn2_b=nrm(13, (Cmid,)),
        bn2_m=nrm(14, (Cmid,)),
        bn2_v=1.0 + 0.1 * jax.random.uniform(ks[15], (Cmid,), jnp.float32),
        bn3_g=1.0 + nrm(16, (Cout,)), bn3_b=nrm(17, (Cout,)),
        bn3_m=nrm(18, (Cout,)),
        bn3_v=1.0 + 0.1 * jax.random.uniform(ks[19], (Cout,), jnp.float32),
        # PReLU slopes (PyTorch default init 0.25 per channel)
        alpha_main=jnp.full((Cout,), 0.25, jnp.float32),
        alpha1=jnp.full((Cmid,), 0.25, jnp.float32),
        alpha2=jnp.full((Cmid,), 0.25, jnp.float32),
        alpha_out=jnp.full((Cout,), 0.25, jnp.float32),
    )

    x = jax.random.normal(ks[20], (N, Cin, H, W), jnp.float32)

    out = downsampling_bottleneck_forward(x, params)
    out = jax.block_until_ready(out)

    ref = reference_forward(x, params)
    assert out.shape == (N, Cout, H // 2, W // 2)
    assert jnp.allclose(out, ref, rtol=1e-3, atol=1e-3), "mismatch vs reference"

    print("KERNEL_OK")
</pallas_src>

<mosaic_0001>
module attributes {stable_mosaic.version = 11 : i64} {
  func.func @_fused_kernel(%arg0: i32, %arg1: memref<1x64x64xf32, #tpu.memory_space<vmem>>, %arg2: memref<64x40xf32, #tpu.memory_space<vmem>>, %arg3: memref<9x8x8xf32, #tpu.memory_space<vmem>>, %arg4: memref<8x32xf32, #tpu.memory_space<vmem>>, %arg5: memref<2x1x40xf32, #tpu.memory_space<vmem>>, %arg6: memref<2x1x8xf32, #tpu.memory_space<vmem>>, %arg7: memref<2x1x32xf32, #tpu.memory_space<vmem>>, %arg8: memref<1x64x32xf32, #tpu.memory_space<vmem>>, %arg9: memref<10x10x8xf32, #tpu.memory_space<vmem>>) attributes {dimension_semantics = [#tpu.dimension_semantics<parallel>], iteration_bounds = array<i64: 2>, scalar_prefetch = 0 : i64, scratch_operands = 1 : i64, tpu.core_type = #tpu.core_type<tc>, window_params = [{transform_indices = @transform_0, window_bounds = array<i64: 1, 64, 64>}, {pipeline_mode = #tpu.pipeline_mode<synchronous>, transform_indices = @transform_1, window_bounds = array<i64: 64, 40>}, {pipeline_mode = #tpu.pipeline_mode<synchronous>, transform_indices = @transform_2, window_bounds = array<i64: 9, 8, 8>}, {pipeline_mode = #tpu.pipeline_mode<synchronous>, transform_indices = @transform_3, window_bounds = array<i64: 8, 32>}, {pipeline_mode = #tpu.pipeline_mode<synchronous>, transform_indices = @transform_4, window_bounds = array<i64: 2, 1, 40>}, {pipeline_mode = #tpu.pipeline_mode<synchronous>, transform_indices = @transform_5, window_bounds = array<i64: 2, 1, 8>}, {pipeline_mode = #tpu.pipeline_mode<synchronous>, transform_indices = @transform_6, window_bounds = array<i64: 2, 1, 32>}, {transform_indices = @transform_7, window_bounds = array<i64: 1, 64, 32>}]} {
    %c0 = arith.constant 0 : index
    %c0_0 = arith.constant 0 : index
    %c0_1 = arith.constant 0 : index
    %0 = vector.load %arg1[%c0, %c0_0, %c0_1] : memref<1x64x64xf32, #tpu.memory_space<vmem>>, vector<1x64x64xf32>
    %1 = vector.shape_cast %0 : vector<1x64x64xf32> to vector<64x64xf32>
    %c0_2 = arith.constant 0 : index
    %c0_3 = arith.constant 0 : index
    %2 = vector.load %arg2[%c0_2, %c0_3] : memref<64x40xf32, #tpu.memory_space<vmem>>, vector<64x40xf32>
    %cst = arith.constant dense<0.000000e+00> : vector<64x40xf32>
    %3 = tpu.matmul %1, %2, %cst {dimension_numbers = #tpu.dot_dimension_numbers<[1], [0], [0], [1], [0, 0, 1, 1], [], []>} : vector<64x64xf32>, vector<64x40xf32>, vector<64x40xf32> -> vector<64x40xf32>
    %c0_4 = arith.constant 0 : index
    %c0_5 = arith.constant 0 : index
    %c0_6 = arith.constant 0 : index
    %4 = vector.load %arg5[%c0_4, %c0_5, %c0_6] : memref<2x1x40xf32, #tpu.memory_space<vmem>>, vector<1x1x40xf32>
    %5 = vector.shape_cast %4 : vector<1x1x40xf32> to vector<1x40xf32>
    %6 = vector.broadcast %5 : vector<1x40xf32> to vector<64x40xf32>
    %7 = arith.addf %3, %6 : vector<64x40xf32>
    %cst_7 = arith.constant 0.000000e+00 : f32
    %8 = vector.broadcast %cst_7 : f32 to vector<64x40xf32>
    %9 = arith.cmpf oge, %7, %8 : vector<64x40xf32>
    %c1 = arith.constant 1 : index
    %c0_8 = arith.constant 0 : index
    %c0_9 = arith.constant 0 : index
    %10 = vector.load %arg5[%c1, %c0_8, %c0_9] : memref<2x1x40xf32, #tpu.memory_space<vmem>>, vector<1x1x40xf32>
    %11 = vector.shape_cast %10 : vector<1x1x40xf32> to vector<1x40xf32>
    %12 = vector.broadcast %11 : vector<1x40xf32> to vector<64x40xf32>
    %13 = arith.mulf %7, %12 : vector<64x40xf32>
    %14 = arith.select %9, %7, %13 : vector<64x40xi1>, vector<64x40xf32>
    %15 = vector.extract_strided_slice %14 {offsets = [0, 0], sizes = [64, 32], strides = [1, 1]} : vector<64x40xf32> to vector<64x32xf32>
    %16 = vector.extract_strided_slice %14 {offsets = [0, 32], sizes = [64, 8], strides = [1, 1]} : vector<64x40xf32> to vector<64x8xf32>
    %cst_10 = arith.constant 0.000000e+00 : f32
    %17 = vector.broadcast %cst_10 : f32 to vector<10x10x8xf32>
    %c0_11 = arith.constant 0 : index
    %c0_12 = arith.constant 0 : index
    %c0_13 = arith.constant 0 : index
    %18 = vector.load %arg9[%c0_11, %c0_12, %c0_13] : memref<10x10x8xf32, #tpu.memory_space<vmem>>, vector<10x10x8xf32>
    tpu.vector_store %arg9[%c0_11, %c0_12, %c0_13], %17 {strides = array<i32>} : memref<10x10x8xf32, #tpu.memory_space<vmem>>, vector<10x10x8xf32>,
    %19 = vector.shape_cast %16 : vector<64x8xf32> to vector<8x8x8xf32>
    %c1_14 = arith.constant 1 : index
    %c1_15 = arith.constant 1 : index
    %c0_16 = arith.constant 0 : index
    %20 = vector.load %arg9[%c1_14, %c1_15, %c0_16] : memref<10x10x8xf32, #tpu.memory_space<vmem>>, vector<8x8x8xf32>
    tpu.vector_store %arg9[%c1_14, %c1_15, %c0_16], %19 {strides = array<i32>} : memref<10x10x8xf32, #tpu.memory_space<vmem>>, vector<8x8x8xf32>,
    %c0_17 = arith.constant 0 : index
    %c0_18 = arith.constant 0 : index
    %c0_19 = arith.constant 0 : index
    %21 = vector.load %arg9[%c0_17, %c0_18, %c0_19] : memref<10x10x8xf32, #tpu.memory_space<vmem>>, vector<8x8x8xf32>
    %22 = vector.shape_cast %21 : vector<8x8x8xf32> to vector<64x8xf32>
    %c0_20 = arith.constant 0 : index
    %c0_21 = arith.constant 0 : index
    %c0_22 = arith.constant 0 : index
    %23 = vector.load %arg3[%c0_20, %c0_21, %c0_22] : memref<9x8x8xf32, #tpu.memory_space<vmem>>, vector<1x8x8xf32>
    %24 = vector.shape_cast %23 : vector<1x8x8xf32> to vector<8x8xf32>
    %cst_23 = arith.constant dense<0.000000e+00> : vector<64x8xf32>
    %25 = tpu.matmul %22, %24, %cst_23 {dimension_numbers = #tpu.dot_dimension_numbers<[1], [0], [0], [1], [0, 0, 1, 1], [], []>} : vector<64x8xf32>, vector<8x8xf32>, vector<64x8xf32> -> vector<64x8xf32>
    %c0_24 = arith.constant 0 : index
    %c1_25 = arith.constant 1 : index
    %c0_26 = arith.constant 0 : index
    %26 = vector.load %arg9[%c0_24, %c1_25, %c0_26] : memref<10x10x8xf32, #tpu.memory_space<vmem>>, vector<8x8x8xf32>
    %27 = vector.shape_cast %26 : vector<8x8x8xf32> to vector<64x8xf32>
    %c1_27 = arith.constant 1 : index
    %c0_28 = arith.constant 0 : index
    %c0_29 = arith.constant 0 : index
    %28 = vector.load %arg3[%c1_27, %c0_28, %c0_29] : memref<9x8x8xf32, #tpu.memory_space<vmem>>, vector<1x8x8xf32>
    %29 = vector.shape_cast %28 : vector<1x8x8xf32> to vector<8x8xf32>
    %cst_30 = arith.constant dense<0.000000e+00> : vector<64x8xf32>
    %30 = tpu.matmul %27, %29, %cst_30 {dimension_numbers = #tpu.dot_dimension_numbers<[1], [0], [0], [1], [0, 0, 1, 1], [], []>} : vector<64x8xf32>, vector<8x8xf32>, vector<64x8xf32> -> vector<64x8xf32>
    %31 = arith.addf %25, %30 : vector<64x8xf32>
    %c0_31 = arith.constant 0 : index
    %c2 = arith.constant 2 : index
    %c0_32 = arith.constant 0 : index
    %32 = vector.load %arg9[%c0_31, %c2, %c0_32] : memref<10x10x8xf32, #tpu.memory_space<vmem>>, vector<8x8x8xf32>
    %33 = vector.shape_cast %32 : vector<8x8x8xf32> to vector<64x8xf32>
    %c2_33 = arith.constant 2 : index
    %c0_34 = arith.constant 0 : index
    %c0_35 = arith.constant 0 : index
    %34 = vector.load %arg3[%c2_33, %c0_34, %c0_35] : memref<9x8x8xf32, #tpu.memory_space<vmem>>, vector<1x8x8xf32>
    %35 = vector.shape_cast %34 : vector<1x8x8xf32> to vector<8x8xf32>
    %cst_36 = arith.constant dense<0.000000e+00> : vector<64x8xf32>
    %36 = tpu.matmul %33, %35, %cst_36 {dimension_numbers = #tpu.dot_dimension_numbers<[1], [0], [0], [1], [0, 0, 1, 1], [], []>} : vector<64x8xf32>, vector<8x8xf32>, vector<64x8xf32> -> vector<64x8xf32>
    %37 = arith.addf %31, %36 : vector<64x8xf32>
    %c1_37 = arith.constant 1 : index
    %c0_38 = arith.constant 0 : index
    %c0_39 = arith.constant 0 : index
    %38 = vector.load %arg9[%c1_37, %c0_38, %c0_39] : memref<10x10x8xf32, #tpu.memory_space<vmem>>, vector<8x8x8xf32>
    %39 = vector.shape_cast %38 : vector<8x8x8xf32> to vector<64x8xf32>
    %c3 = arith.constant 3 : index
    %c0_40 = arith.constant 0 : index
    %c0_41 = arith.constant 0 : index
    %40 = vector.load %arg3[%c3, %c0_40, %c0_41] : memref<9x8x8xf32, #tpu.memory_space<vmem>>, vector<1x8x8xf32>
    %41 = vector.shape_cast %40 : vector<1x8x8xf32> to vector<8x8xf32>
    %cst_42 = arith.constant dense<0.000000e+00> : vector<64x8xf32>
    %42 = tpu.matmul %39, %41, %cst_42 {dimension_numbers = #tpu.dot_dimension_numbers<[1], [0], [0], [1], [0, 0, 1, 1], [], []>} : vector<64x8xf32>, vector<8x8xf32>, vector<64x8xf32> -> vector<64x8xf32>
    %43 = arith.addf %37, %42 : vector<64x8xf32>
    %c1_43 = arith.constant 1 : index
    %c1_44 = arith.constant 1 : index
    %c0_45 = arith.constant 0 : index
    %44 = vector.load %arg9[%c1_43, %c1_44, %c0_45] : memref<10x10x8xf32, #tpu.memory_space<vmem>>, vector<8x8x8xf32>
    %45 = vector.shape_cast %44 : vector<8x8x8xf32> to vector<64x8xf32>
    %c4 = arith.constant 4 : index
    %c0_46 = arith.constant 0 : index
    %c0_47 = arith.constant 0 : index
    %46 = vector.load %arg3[%c4, %c0_46, %c0_47] : memref<9x8x8xf32, #tpu.memory_space<vmem>>, vector<1x8x8xf32>
    %47 = vector.shape_cast %46 : vector<1x8x8xf32> to vector<8x8xf32>
    %cst_48 = arith.constant dense<0.000000e+00> : vector<64x8xf32>
    %48 = tpu.matmul %45, %47, %cst_48 {dimension_numbers = #tpu.dot_dimension_numbers<[1], [0], [0], [1], [0, 0, 1, 1], [], []>} : vector<64x8xf32>, vector<8x8xf32>, vector<64x8xf32> -> vector<64x8xf32>
    %49 = arith.addf %43, %48 : vector<64x8xf32>
    %c1_49 = arith.constant 1 : index
    %c2_50 = arith.constant 2 : index
    %c0_51 = arith.constant 0 : index
    %50 = vector.load %arg9[%c1_49, %c2_50, %c0_51] : memref<10x10x8xf32, #tpu.memory_space<vmem>>, vector<8x8x8xf32>
    %51 = vector.shape_cast %50 : vector<8x8x8xf32> to vector<64x8xf32>
    %c5 = arith.constant 5 : index
    %c0_52 = arith.constant 0 : index
    %c0_53 = arith.constant 0 : index
    %52 = vector.load %arg3[%c5, %c0_52, %c0_53] : memref<9x8x8xf32, #tpu.memory_space<vmem>>, vector<1x8x8xf32>
    %53 = vector.shape_cast %52 : vector<1x8x8xf32> to vector<8x8xf32>
    %cst_54 = arith.constant dense<0.000000e+00> : vector<64x8xf32>
    %54 = tpu.matmul %51, %53, %cst_54 {dimension_numbers = #tpu.dot_dimension_numbers<[1], [0], [0], [1], [0, 0, 1, 1], [], []>} : vector<64x8xf32>, vector<8x8xf32>, vector<64x8xf32> -> vector<64x8xf32>
    %55 = arith.addf %49, %54 : vector<64x8xf32>
    %c2_55 = arith.constant 2 : index
    %c0_56 = arith.constant 0 : index
    %c0_57 = arith.constant 0 : index
    %56 = vector.load %arg9[%c2_55, %c0_56, %c0_57] : memref<10x10x8xf32, #tpu.memory_space<vmem>>, vector<8x8x8xf32>
    %57 = vector.shape_cast %56 : vector<8x8x8xf32> to vector<64x8xf32>
    %c6 = arith.constant 6 : index
    %c0_58 = arith.constant 0 : index
    %c0_59 = arith.constant 0 : index
    %58 = vector.load %arg3[%c6, %c0_58, %c0_59] : memref<9x8x8xf32, #tpu.memory_space<vmem>>, vector<1x8x8xf32>
    %59 = vector.shape_cast %58 : vector<1x8x8xf32> to vector<8x8xf32>
    %cst_60 = arith.constant dense<0.000000e+00> : vector<64x8xf32>
    %60 = tpu.matmul %57, %59, %cst_60 {dimension_numbers = #tpu.dot_dimension_numbers<[1], [0], [0], [1], [0, 0, 1, 1], [], []>} : vector<64x8xf32>, vector<8x8xf32>, vector<64x8xf32> -> vector<64x8xf32>
    %61 = arith.addf %55, %60 : vector<64x8xf32>
    %c2_61 = arith.constant 2 : index
    %c1_62 = arith.constant 1 : index
    %c0_63 = arith.constant 0 : index
    %62 = vector.load %arg9[%c2_61, %c1_62, %c0_63] : memref<10x10x8xf32, #tpu.memory_space<vmem>>, vector<8x8x8xf32>
    %63 = vector.shape_cast %62 : vector<8x8x8xf32> to vector<64x8xf32>
    %c7 = arith.constant 7 : index
    %c0_64 = arith.constant 0 : index
    %c0_65 = arith.constant 0 : index
    %64 = vector.load %arg3[%c7, %c0_64, %c0_65] : memref<9x8x8xf32, #tpu.memory_space<vmem>>, vector<1x8x8xf32>
    %65 = vector.shape_cast %64 : vector<1x8x8xf32> to vector<8x8xf32>
    %cst_66 = arith.constant dense<0.000000e+00> : vector<64x8xf32>
    %66 = tpu.matmul %63, %65, %cst_66 {dimension_numbers = #tpu.dot_dimension_numbers<[1], [0], [0], [1], [0, 0, 1, 1], [], []>} : vector<64x8xf32>, vector<8x8xf32>, vector<64x8xf32> -> vector<64x8xf32>
    %67 = arith.addf %61, %66 : vector<64x8xf32>
    %c2_67 = arith.constant 2 : index
    %c2_68 = arith.constant 2 : index
    %c0_69 = arith.constant 0 : index
    %68 = vector.load %arg9[%c2_67, %c2_68, %c0_69] : memref<10x10x8xf32, #tpu.memory_space<vmem>>, vector<8x8x8xf32>
    %69 = vector.shape_cast %68 : vector<8x8x8xf32> to vector<64x8xf32>
    %c8 = arith.constant 8 : index
    %c0_70 = arith.constant 0 : index
    %c0_71 = arith.constant 0 : index
    %70 = vector.load %arg3[%c8, %c0_70, %c0_71] : memref<9x8x8xf32, #tpu.memory_space<vmem>>, vector<1x8x8xf32>
    %71 = vector.shape_cast %70 : vector<1x8x8xf32> to vector<8x8xf32>
    %cst_72 = arith.constant dense<0.000000e+00> : vector<64x8xf32>
    %72 = tpu.matmul %69, %71, %cst_72 {dimension_numbers = #tpu.dot_dimension_numbers<[1], [0], [0], [1], [0, 0, 1, 1], [], []>} : vector<64x8xf32>, vector<8x8xf32>, vector<64x8xf32> -> vector<64x8xf32>
    %73 = arith.addf %67, %72 : vector<64x8xf32>
    %c0_73 = arith.constant 0 : index
    %c0_74 = arith.constant 0 : index
    %c0_75 = arith.constant 0 : index
    %74 = vector.load %arg6[%c0_73, %c0_74, %c0_75] : memref<2x1x8xf32, #tpu.memory_space<vmem>>, vector<1x1x8xf32>
    %75 = vector.shape_cast %74 : vector<1x1x8xf32> to vector<1x8xf32>
    %76 = vector.broadcast %75 : vector<1x8xf32> to vector<64x8xf32>
    %77 = arith.addf %73, %76 : vector<64x8xf32>
    %cst_76 = arith.constant 0.000000e+00 : f32
    %78 = vector.broadcast %cst_76 : f32 to vector<64x8xf32>
    %79 = arith.cmpf oge, %77, %78 : vector<64x8xf32>
    %c1_77 = arith.constant 1 : index
    %c0_78 = arith.constant 0 : index
    %c0_79 = arith.constant 0 : index
    %80 = vector.load %arg6[%c1_77, %c0_78, %c0_79] : memref<2x1x8xf32, #tpu.memory_space<vmem>>, vector<1x1x8xf32>
    %81 = vector.shape_cast %80 : vector<1x1x8xf32> to vector<1x8xf32>
    %82 = vector.broadcast %81 : vector<1x8xf32> to vector<64x8xf32>
    %83 = arith.mulf %77, %82 : vector<64x8xf32>
    %84 = arith.select %79, %77, %83 : vector<64x8xi1>, vector<64x8xf32>
    %c0_80 = arith.constant 0 : index
    %c0_81 = arith.constant 0 : index
    %85 = vector.load %arg4[%c0_80, %c0_81] : memref<8x32xf32, #tpu.memory_space<vmem>>, vector<8x32xf32>
    %cst_82 = arith.constant dense<0.000000e+00> : vector<64x32xf32>
    %86 = tpu.matmul %84, %85, %cst_82 {dimension_numbers = #tpu.dot_dimension_numbers<[1], [0], [0], [1], [0, 0, 1, 1], [], []>} : vector<64x8xf32>, vector<8x32xf32>, vector<64x32xf32> -> vector<64x32xf32>
    %c0_83 = arith.constant 0 : index
    %c0_84 = arith.constant 0 : index
    %c0_85 = arith.constant 0 : index
    %87 = vector.load %arg7[%c0_83, %c0_84, %c0_85] : memref<2x1x32xf32, #tpu.memory_space<vmem>>, vector<1x1x32xf32>
    %88 = vector.shape_cast %87 : vector<1x1x32xf32> to vector<1x32xf32>
    %89 = vector.broadcast %88 : vector<1x32xf32> to vector<64x32xf32>
    %90 = arith.addf %86, %89 : vector<64x32xf32>
    %91 = arith.addf %90, %15 : vector<64x32xf32>
    %cst_86 = arith.constant 0.000000e+00 : f32
    %92 = vector.broadcast %cst_86 : f32 to vector<64x32xf32>
    %93 = arith.cmpf oge, %91, %92 : vector<64x32xf32>
    %c1_87 = arith.constant 1 : index
    %c0_88 = arith.constant 0 : index
    %c0_89 = arith.constant 0 : index
    %94 = vector.load %arg7[%c1_87, %c0_88, %c0_89] : memref<2x1x32xf32, #tpu.memory_space<vmem>>, vector<1x1x32xf32>
    %95 = vector.shape_cast %94 : vector<1x1x32xf32> to vector<1x32xf32>
    %96 = vector.broadcast %95 : vector<1x32xf32> to vector<64x32xf32>
    %97 = arith.mulf %91, %96 : vector<64x32xf32>
    %98 = arith.select %93, %91, %97 : vector<64x32xi1>, vector<64x32xf32>
    %c0_90 = arith.constant 0 : index
    %c0_91 = arith.constant 0 : index
    %c0_92 = arith.constant 0 : index
    %99 = vector.load %arg8[%c0_90, %c0_91, %c0_92] : memref<1x64x32xf32, #tpu.memory_space<vmem>>, vector<1x64x32xf32>
    %100 = vector.shape_cast %99 : vector<1x64x32xf32> to vector<64x32xf32>
    %101 = vector.shape_cast %98 : vector<64x32xf32> to vector<1x64x32xf32>
    tpu.vector_store %arg8[%c0_90, %c0_91, %c0_92], %101 {strides = array<i32>} : memref<1x64x32xf32, #tpu.memory_space<vmem>>, vector<1x64x32xf32>,
    return
  }
  func.func @transform_0(%arg0: i32) -> (i32, i32, i32) {
    %c0_i32 = arith.constant 0 : i32
    %c0_i32_0 = arith.constant 0 : i32
    %c0_i32_1 = arith.constant 0 : i32
    return %arg0, %c0_i32, %c0_i32_0 : i32, i32, i32
  }
  func.func @transform_1(%arg0: i32) -> (i32, i32) {
    %c0_i32 = arith.constant 0 : i32
    %c0_i32_0 = arith.constant 0 : i32
    %c0_i32_1 = arith.constant 0 : i32
    return %c0_i32, %c0_i32_0 : i32, i32
  }
  func.func @transform_2(%arg0: i32) -> (i32, i32, i32) {
    %c0_i32 = arith.constant 0 : i32
    %c0_i32_0 = arith.constant 0 : i32
    %c0_i32_1 = arith.constant 0 : i32
    %c0_i32_2 = arith.constant 0 : i32
    return %c0_i32, %c0_i32_0, %c0_i32_1 : i32, i32, i32
  }
  func.func @transform_3(%arg0: i32) -> (i32, i32) {
    %c0_i32 = arith.constant 0 : i32
    %c0_i32_0 = arith.constant 0 : i32
    %c0_i32_1 = arith.constant 0 : i32
    return %c0_i32, %c0_i32_0 : i32, i32
  }
  func.func @transform_4(%arg0: i32) -> (i32, i32, i32) {
    %c0_i32 = arith.constant 0 : i32
    %c0_i32_0 = arith.constant 0 : i32
    %c0_i32_1 = arith.constant 0 : i32
    %c0_i32_2 = arith.constant 0 : i32
    return %c0_i32, %c0_i32_0, %c0_i32_1 : i32, i32, i32
  }
  func.func @transform_5(%arg0: i32) -> (i32, i32, i32) {
    %c0_i32 = arith.constant 0 : i32
    %c0_i32_0 = arith.constant 0 : i32
    %c0_i32_1 = arith.constant 0 : i32
    %c0_i32_2 = arith.constant 0 : i32
    return %c0_i32, %c0_i32_0, %c0_i32_1 : i32, i32, i32
  }
  func.func @transform_6(%arg0: i32) -> (i32, i32, i32) {
    %c0_i32 = arith.constant 0 : i32
    %c0_i32_0 = arith.constant 0 : i32
    %c0_i32_1 = arith.constant 0 : i32
    %c0_i32_2 = arith.constant 0 : i32
    return %c0_i32, %c0_i32_0, %c0_i32_1 : i32, i32, i32
  }
  func.func @transform_7(%arg0: i32) -> (i32, i32, i32) {
    %c0_i32 = arith.constant 0 : i32
    %c0_i32_0 = arith.constant 0 : i32
    %c0_i32_1 = arith.constant 0 : i32
    return %arg0, %c0_i32, %c0_i32_0 : i32, i32, i32
  }
}

</mosaic_0001>

<bundles_post_ra>
// kernel: tpu_custom_call.1
= control target key start
LH: loop header
LB: loop body
LE: loop exit
PB: predicated region body
PF: predicated region fallthrough
CT: control target
= control target key end

     0   :  { %s1581_s24 = smov 0   ;;  %s2010_s0 = inlined_call_operand.vmem [shape: f32[2,64,64], index: 0, kind: input, shape index: {}]   ;;  %s2011_s1 = inlined_call_operand.vmem [shape: f32[64,40], index: 1, kind: input, shape index: {}]   ;;  %s2012_s2 = inlined_call_operand.vmem [shape: f32[9,8,8], index: 2, kind: input, shape index: {}]   ;;  %s2013_s3 = inlined_call_operand.vmem [shape: f32[8,32], index: 3, kind: input, shape index: {}]   ;;  %s2014_s4 = inlined_call_operand.vmem [shape: f32[2,1,40], index: 4, kind: input, shape index: {}]   ;;  %s2015_s5 = inlined_call_operand.vmem [shape: f32[2,1,8], index: 5, kind: input, shape index: {}]   ;;  %s2016_s6 = inlined_call_operand.vmem [shape: f32[2,1,32], index: 6, kind: input, shape index: {}]   ;;  %s2017_s7 = inlined_call_operand.vmem [shape: f32[2,64,32], index: 7, kind: output, shape index: {}]  }
   0x1 LB: > { %s1400_s25 = sadd.s32 4294967295, %s1537_s24   ;;  %p1404_p0 = scmp.ge.s32.totalorder %s1537_s24, 1  ;;  %s1537_s24 = sphi %s1581_s24, %s17_s24  }
   0x2   : > { %p237_p1 = scmp.lt.s32.totalorder %s1537_s24, 3 }
   0x4   : > { %p238_p2 = pnand %p1404_p0, %p237_p1 }
   0x5   : > { %p269_p3 = scmp.lt.s32.totalorder (!%p238_p2), %s1400_s25, 1  ;;  %s1539_s29 = smov (!%p238_p2), 96  }
   0x6   : > { %241 = sbr.rel (%p238_p2) target bundleno = 738 (0x2e2), region = 48 }
   0xb   : > { %v294_v0 = vld [vmem:[%s2011_s1 + $0x38] sm:$0xff]  ;;  %v293_v1 = vld [vmem:[%s2011_s1 + $0x30] sm:$0xff]  ;;  %v292_v2 = vld [vmem:[%s2011_s1 + $0x28] sm:$0xff]  ;;  %s2019_s25 = smov (!%p269_p3, %s1400_s25), 1  ;;  %vm299_vm0 = vcmask 523264   ;;  %vm394_vm5 = vcmask 64512  }
   0xc   : > { %332 = vmatpush.msra.mxu0 %v294_v0  ;;  %v291_v3 = vld [vmem:[%s2011_s1 + $0x20] sm:$0xff]  ;;  %v290_v4 = vld [vmem:[%s2011_s1 + $0x18] sm:$0xff]  ;;  %s1510_s13 = sshll.u32 %s2019_s25, 6  ;;  %v289_v5 = vld [vmem:[%s2011_s1 + $0x10] sm:$0xff]  ;;  %v1540_v34 = vmov 0.0   ;;  %vm396_vm6 = vcmask 58368  }
   0xd   : > { %v288_v6 = vld [vmem:[%s2011_s1 + $0x8] sm:$0xff]  ;;  %s273_s20 = scalar_lea.vmem %s2010_s0, %s1510_s13  ;;  %v287_v7 = vld [vmem:[%s2011_s1] sm:$0xff]  ;;  %395 = vst.msk [vmem:[#allocation2] sm:$0xff] %vm394_vm5, %v1540_v34  ;;  %v1435_v55 = vld [vmem:[%s2012_s2 + $0x10] sm:$0xff]  ;;  %s1982_s18 = scalar_lea.vmem %s2017_s7, %s1510_s13 }
   0xe   : > { %333 = vmatpush.msra.mxu0 %v293_v1  ;;  %v279_v8 = vld [vmem:[%s273_s20] sm:$0xff]  ;;  %v280_v9 = vld [vmem:[%s273_s20 + $0x8] sm:$0xff]  ;;  %v281_v10 = vld [vmem:[%s273_s20 + $0x10] sm:$0xff]  ;;  %397 = vst.msk [vmem:[#allocation2 + $0x8] sm:$0x3] %vm396_vm6, %v1540_v34  ;;  %1514 = vmatpush.msra.mxu3 %v1435_v55 }
   0xf   : > { %v282_v11 = vld [vmem:[%s273_s20 + $0x18] sm:$0xff]  ;;  %v283_v12 = vld [vmem:[%s273_s20 + $0x20] sm:$0xff]  ;;  %v284_v13 = vld [vmem:[%s273_s20 + $0x28] sm:$0xff]  ;;  %398 = vst.msk [vmem:[#allocation2 + $0x10] sm:$0xff] %vm394_vm5, %v1540_v34 }
  0x10   : > { %334 = vmatpush.msra.mxu0 %v292_v2  ;;  %v285_v14 = vld [vmem:[%s273_s20 + $0x30] sm:$0xff]  ;;  %v286_v15 = vld [vmem:[%s273_s20 + $0x38] sm:$0xff]  ;;  %v1632_v16 = vld [vmem:[%s2014_s4] ss:$0 sm:$0xff]  ;;  %399 = vst.msk [vmem:[#allocation2 + $0x18] sm:$0x3] %vm396_vm6, %v1540_v34 }
  0x11   : > { %v1637_v17 = vld [vmem:[%s2014_s4 + $0x1] ss:$0 sm:$0xff]  ;;  %v1418_v33 = vld [vmem:[%s2012_s2 + $0x8] sm:$0xff]  ;;  %400 = vst.msk [vmem:[#allocation2 + $0x20] sm:$0xff] %vm394_vm5, %v1540_v34  ;;  %v1444_v58 = vld [vmem:[%s2012_s2 + $0x18] sm:$0xff] }
  0x12   : > { %335 = vmatpush.msra.mxu0 %v291_v3  ;;  %1512 = vmatpush.msra.mxu1 %v1418_v33  ;;  %v465_v36 = vld [vmem:[%s2012_s2] sm:$0xff]  ;;  %401 = vst.msk [vmem:[#allocation2 + $0x28] sm:$0x3] %vm396_vm6, %v1540_v34  ;;  %v1471_v59 = vld [vmem:[%s2012_s2 + $0x30] sm:$0xff] }
  0x13   : > { %1513 = vmatpush.msra.mxu2 %v465_v36  ;;  %402 = vst.msk [vmem:[#allocation2 + $0x30] sm:$0xff] %vm394_vm5, %v1540_v34  ;;  %v1453_v57 = vld [vmem:[%s2012_s2 + $0x20] sm:$0xff] }
  0x14   : > { %336 = vmatpush.msra.mxu0 %v290_v4  ;;  %403 = vst.msk [vmem:[#allocation2 + $0x38] sm:$0x3] %vm396_vm6, %v1540_v34  ;;  %v457_v54 = vld [vmem:[#allocation2] sm:$0xff]  ;;  %738 = vmatpush.msrb.mxu1 %v1444_v58 }
  0x15   : > { %v466_v40 = vld [vmem:[#allocation2 + $0x1] sm:$0xff]  ;;  %404 = vst.msk [vmem:[#allocation2 + $0x40] sm:$0xff] %vm394_vm5, %v1540_v34  ;;  %821 = vmatpush.msrb.mxu2 %v1453_v57 }
  0x16   : > { %337 = vmatpush.msra.mxu0 %v289_v5  ;;  %405 = vst.msk [vmem:[#allocation2 + $0x48] sm:$0x3] %vm396_vm6, %v1540_v34  ;;  %v606_v56 = vld [vmem:[#allocation2 + $0x2] sm:$0xff] }
  0x17   : > { %406 = vst.msk [vmem:[#allocation2 + $0x50] sm:$0xff] %vm394_vm5, %v1540_v34  ;;  %v1229_v57 = vld [vmem:[%s2013_s3] sm:$0xff] }
  0x18   : > { %338 = vmatpush.msra.mxu0 %v288_v6  ;;  %407 = vst.msk [vmem:[#allocation2 + $0x58] sm:$0x3] %vm396_vm6, %v1540_v34 }
  0x19   : > { %408 = vst.msk [vmem:[#allocation2 + $0x60] sm:$0xff] %vm394_vm5, %v1540_v34 }
  0x1a   : > { %339 = vmatpush.msra.mxu0 %v287_v7  ;;  %409 = vst.msk [vmem:[#allocation2 + $0x68] sm:$0x3] %vm396_vm6, %v1540_v34 }
  0x1b   : > { %1409 = vmatmul.msk.f32.vlgmr.msra.gmra.mxu0 %vm299_vm0, %v279_v8  ;;  %410 = vst.msk [vmem:[#allocation2 + $0x70] sm:$0xff] %vm394_vm5, %v1540_v34 }
  0x1c   : > { %515 = vmatpush.msrb.mxu0 %v1418_v33  ;;  %411 = vst.msk [vmem:[#allocation2 + $0x78] sm:$0x3] %vm396_vm6, %v1540_v34 }
  0x1d   : > { %412 = vst.msk [vmem:[#allocation2 + $0x80] sm:$0xff] %vm394_vm5, %v1540_v34 }
  0x1e   : > { %580 = vmatpush.msra.mxu0 %v465_v36  ;;  %413 = vst.msk [vmem:[#allocation2 + $0x88] sm:$0x3] %vm396_vm6, %v1540_v34 }
  0x1f   : > { %414 = vst.msk [vmem:[#allocation2 + $0x90] sm:$0xff] %vm394_vm5, %v1540_v34 }
  0x20   : > { %415 = vst.msk [vmem:[#allocation2 + $0x98] sm:$0x3] %vm396_vm6, %v1540_v34 }
  0x23   : > { %1410 = vmatmul.msk.f32.gmra.mxu0 %vm299_vm0, %v280_v9 }
  0x2b   : > { %1411 = vmatmul.msk.f32.gmra.mxu0 %vm299_vm0, %v281_v10 }
  0x33   : > { %1412 = vmatmul.msk.f32.gmra.mxu0 %vm299_vm0, %v282_v11  ;;  %v1462_v11 = vld [vmem:[%s2012_s2 + $0x28] sm:$0xff] }
  0x34   : > { %904 = vmatpush.msrb.mxu3 %v1462_v11 }
  0x3b   : > { %1413 = vmatmul.msk.f32.gmra.mxu0 %vm299_vm0, %v283_v12 }
  0x43   : > { %1414 = vmatmul.msk.f32.gmra.mxu0 %vm299_vm0, %v284_v13 }
  0x4b   : > { %1415 = vmatmul.msk.f32.gmra.mxu0 %vm299_vm0, %v285_v14 }
  0x53   : > { %1416 = vmatmul.msk.f32.gmra.mxu0 %vm299_vm0, %v286_v15  ;;  %v1489_v15 = vld [vmem:[%s2012_s2 + $0x40] sm:$0xff] }
  0x5b   : > { %1419 = vmatmul.msk.f32.vlgmr.msrb.gmra.mxu0 %vm394_vm5, %v466_v40 }
  0x5c   : > { %655 = vmatpush.msrb.mxu0 %v1435_v55 }
  0x63   : > { %1427 = vmatmul.msk.f32.vlgmr.msra.gmra.mxu0 %vm394_vm5, %v457_v54 }
  0x64   : > { %988 = vmatpush.msra.mxu0 %v1471_v59 }
  0x6b   : > { %1436 = vmatmul.msk.f32.vlgmr.msrb.gmra.mxu0 %vm394_vm5, %v606_v56 }
  0x98   : > { %v341_v18 = vpop.f32.mrf.mxu0 }
  0x99   : > { %v342_v19 = vadd.f32 %v1632_v16, %v341_v18 }
  0x9b   : > { %vm365_vm1 = vcmp.ge.f32.partialorder %v342_v19, 0.0  ;;  %v378_v20 = vmul.f32 %v1637_v17, %v342_v19 }
  0x9d   : > { %v1641_v21 = vsel %vm365_vm1, %v342_v19, %v378_v20 }
  0x9e   : > { %424 = vrot.lane.b32.xlu0 %v1641_v21, %s1539_s29 }
  0xa0   : > { %v344_v22 = vpop.f32.mrf.mxu0 }
  0xa1   : > { %v345_v23 = vadd.f32 %v1632_v16, %v344_v22 }
  0xa3   : > { %v379_v24 = vmul.f32 %v1637_v17, %v345_v23  ;;  %vm366_vm2 = vcmp.ge.f32.partialorder %v345_v23, 0.0 }
  0xa5   : > { %v1647_v25 = vsel %vm366_vm2, %v345_v23, %v379_v24 }
  0xa6   : > { %426 = vrot.lane.b32.xlu0 %v1647_v25, %s1539_s29 }
  0xa8   : > { %v347_v26 = vpop.f32.mrf.mxu0 }
  0xa9   : > { %v348_v27 = vadd.f32 %v1632_v16, %v347_v26 }
  0xab   : > { %vm367_vm3 = vcmp.ge.f32.partialorder %v348_v27, 0.0  ;;  %v380_v28 = vmul.f32 %v1637_v17, %v348_v27 }
  0xad   : > { %v1653_v29 = vsel %vm367_vm3, %v348_v27, %v380_v28 }
  0xae   : > { %428 = vrot.lane.b32.xlu1 %v1653_v29, %s1539_s29 }
  0xb0   : > { %v350_v30 = vpop.f32.mrf.mxu0 }
  0xb1   : > { %v351_v31 = vadd.f32 %v1632_v16, %v350_v30 }
  0xb3   : > { %v381_v32 = vmul.f32 %v1637_v17, %v351_v31  ;;  %vm368_vm4 = vcmp.ge.f32.partialorder %v351_v31, 0.0 }
  0xb5   : > { %v1663_v35 = vsel %vm368_vm4, %v351_v31, %v381_v32  ;;  %v946_v32 = vld [vmem:[#allocation2 + $0x90] sm:$0xff]  ;;  %vm1336_vm4 = vcmask 261120  }
  0xb6   : > { %430 = vrot.lane.b32.xlu1 %v1663_v35, %s1539_s29 }
  0xb8   : > { %v353_v37 = vpop.f32.mrf.mxu0 }
  0xb9   : > { %v354_v38 = vadd.f32 %v1632_v16, %v353_v37 }
  0xbb   : > { %vm369_vm7 = vcmp.ge.f32.partialorder %v354_v38, 0.0  ;;  %v382_v39 = vmul.f32 %v1637_v17, %v354_v38 }
  0xbd   : > { %v1680_v41 = vsel %vm369_vm7, %v354_v38, %v382_v39 }
  0xbe   : > { %432 = vrot.lane.b32.xlu2 %v1680_v41, %s1539_s29 }
  0xc0   : > { %v356_v42 = vpop.f32.mrf.mxu0 }
  0xc1   : > { %v357_v43 = vadd.f32 %v1632_v16, %v356_v42 }
  0xc3   : > { %v383_v44 = vmul.f32 %v1637_v17, %v357_v43  ;;  %vm370_vm8 = vcmp.ge.f32.partialorder %v357_v43, 0.0 }
  0xc5   : > { %v1695_v45 = vsel %vm370_vm8, %v357_v43, %v383_v44 }
  0xc6   : > { %434 = vrot.lane.b32.xlu2 %v1695_v45, %s1539_s29 }
  0xc8   : > { %v359_v46 = vpop.f32.mrf.mxu0 }
  0xc9   : > { %v360_v47 = vadd.f32 %v1632_v16, %v359_v46 }
  0xcb   : > { %v384_v48 = vmul.f32 %v1637_v17, %v360_v47  ;;  %vm371_vm9 = vcmp.ge.f32.partialorder %v360_v47, 0.0 }
  0xcd   : > { %v1704_v49 = vsel %vm371_vm9, %v360_v47, %v384_v48 }
  0xce   : > { %436 = vrot.lane.b32.xlu0 %v1704_v49, %s1539_s29 }
  0xd0   : > { %v362_v50 = vpop.f32.mrf.mxu0 }
  0xd1   : > { %v363_v51 = vadd.f32 %v1632_v16, %v362_v50  ;;  %v1480_v16 = vld [vmem:[%s2012_s2 + $0x38] sm:$0xff] }
  0xd3   : > { %v385_v52 = vmul.f32 %v1637_v17, %v363_v51  ;;  %vm372_vm10 = vcmp.ge.f32.partialorder %v363_v51, 0.0 }
  0xd5   : > { %v1710_v53 = vsel %vm372_vm10, %v363_v51, %v385_v52 }
  0xd6   : > { %438 = vrot.lane.b32.xlu1 %v1710_v53, %s1539_s29 }
  0xd8   : > { %v517_v11 = vpop.f32.mrf.mxu0 }
 0x110   : > { %v425_v60 = vpop.permute.xlu0 %424 }
 0x111   : > { %449 = vst.msk [vmem:[#allocation2 + $0x11] sm:$0xff] %vm394_vm5, %v425_v60 }
 0x118   : > { %v433_v61 = vpop.permute.xlu2 %432  ;;  %v427_v62 = vpop.permute.xlu0 %426  ;;  %v1729_v63 = vld [vmem:[#allocation2 + $0x11] sm:$0xff] }
 0x119   : > { %v1731_v0 = vld [vmem:[#allocation2 + $0x10] sm:$0xff]  ;;  %453 = vst.msk [vmem:[#allocation2 + $0x51] sm:$0xff] %vm394_vm5, %v433_v61  ;;  %1420 = vmatmul.msk.f32.vlgmr.msra.gmra.mxu1 %vm394_vm5, %v1729_v63 }
 0x11a   : > { %v1733_v1 = vld [vmem:[#allocation2 + $0x12] sm:$0xff]  ;;  %1428 = vmatmul.msk.f32.vlgmr.msra.gmra.mxu2 %vm394_vm5, %v1731_v0  ;;  %450 = vst.msk [vmem:[#allocation2 + $0x21] sm:$0xff] %vm394_vm5, %v427_v62  ;;  %1071 = vmatpush.msra.mxu1 %v1480_v16  ;;  %v582_v16 = vpop.f32.mrf.mxu0 }
 0x11b   : > { %1437 = vmatmul.msk.f32.vlgmr.msra.gmra.mxu3 %vm394_vm5, %v1733_v1  ;;  %1154 = vmatpush.msra.mxu2 %v1489_v15  ;;  %v1029_v62 = vld [vmem:[#allocation2 + $0x91] sm:$0xff] }
 0x11c   : > { %1273 = vmatpush.msra.mxu3 %v1229_v57 }
 0x120   : > { %v435_v2 = vpop.permute.xlu2 %434  ;;  %v429_v3 = vpop.permute.xlu1 %428  ;;  %v1785_v17 = vld [vmem:[#allocation2 + $0x51] sm:$0xff] }
 0x121   : > { %454 = vst.msk [vmem:[#allocation2 + $0x61] sm:$0xff] %vm394_vm5, %v435_v2  ;;  %v1744_v4 = vld [vmem:[#allocation2 + $0x21] sm:$0xff]  ;;  %v462_v18 = vld [vmem:[#allocation2 + $0x50] sm:$0xff] }
 0x122   : > { %v459_v5 = vld [vmem:[#allocation2 + $0x20] sm:$0xff]  ;;  %451 = vst.msk [vmem:[#allocation2 + $0x31] sm:$0xff] %vm394_vm5, %v429_v3  ;;  %1421 = vmatmul.msk.f32.gmra.mxu1 %vm394_vm5, %v1744_v4  ;;  %v1790_v19 = vld [vmem:[#allocation2 + $0x52] sm:$0xff] }
 0x123   : > { %v1746_v6 = vld [vmem:[#allocation2 + $0x22] sm:$0xff]  ;;  %1429 = vmatmul.msk.f32.gmra.mxu2 %vm394_vm5, %v459_v5  ;;  %1472 = vmatmul.msk.f32.vlgmr.msra.gmra.mxu0 %vm394_vm5, %v459_v5 }
 0x124   : > { %1438 = vmatmul.msk.f32.gmra.mxu3 %vm394_vm5, %v1746_v6 }
 0x128   : > { %v431_v7 = vpop.permute.xlu1 %430  ;;  %v1796_v22 = vld [vmem:[#allocation2 + $0x61] sm:$0xff] }
 0x129   : > { %452 = vst.msk [vmem:[#allocation2 + $0x41] sm:$0xff] %vm394_vm5, %v431_v7  ;;  %v1756_v8 = vld [vmem:[#allocation2 + $0x31] sm:$0xff]  ;;  %v463_v23 = vld [vmem:[#allocation2 + $0x60] sm:$0xff] }
 0x12a   : > { %v460_v9 = vld [vmem:[#allocation2 + $0x30] sm:$0xff]  ;;  %1422 = vmatmul.msk.f32.gmra.mxu1 %vm394_vm5, %v1756_v8  ;;  %v612_v24 = vld [vmem:[#allocation2 + $0x62] sm:$0xff] }
 0x12b   : > { %v1758_v10 = vld [vmem:[#allocation2 + $0x32] sm:$0xff]  ;;  %1430 = vmatmul.msk.f32.gmra.mxu2 %vm394_vm5, %v460_v9  ;;  %1473 = vmatmul.msk.f32.gmra.mxu0 %vm394_vm5, %v460_v9 }
 0x12c   : > { %1439 = vmatmul.msk.f32.gmra.mxu3 %vm394_vm5, %v1758_v10 }
 0x130   : > { %v1769_v12 = vld [vmem:[#allocation2 + $0x41] sm:$0xff] }
 0x131   : > { %v461_v13 = vld [vmem:[#allocation2 + $0x40] sm:$0xff] }
 0x132   : > { %v1771_v14 = vld [vmem:[#allocation2 + $0x42] sm:$0xff]  ;;  %1423 = vmatmul.msk.f32.gmra.mxu1 %vm394_vm5, %v1769_v12 }
 0x133   : > { %1431 = vmatmul.msk.f32.gmra.mxu2 %vm394_vm5, %v461_v13  ;;  %1474 = vmatmul.msk.f32.gmra.mxu0 %vm394_vm5, %v461_v13 }
 0x134   : > { %1440 = vmatmul.msk.f32.gmra.mxu3 %vm394_vm5, %v1771_v14 }
 0x13a   : > { %1424 = vmatmul.msk.f32.gmra.mxu1 %vm394_vm5, %v1785_v17 }
 0x13b   : > { %1432 = vmatmul.msk.f32.gmra.mxu2 %vm394_vm5, %v462_v18  ;;  %1475 = vmatmul.msk.f32.gmra.mxu0 %vm394_vm5, %v462_v18 }
 0x13c   : > { %1441 = vmatmul.msk.f32.gmra.mxu3 %vm394_vm5, %v1790_v19 }
 0x140   : > { %v437_v20 = vpop.permute.xlu0 %436 }
 0x141   : > { %455 = vst.msk [vmem:[#allocation2 + $0x71] sm:$0xff] %vm394_vm5, %v437_v20  ;;  %v657_v20 = vpop.f32.mrf.mxu0 }
 0x142   : > { %1425 = vmatmul.msk.f32.gmra.mxu1 %vm394_vm5, %v1796_v22 }
 0x143   : > { %1433 = vmatmul.msk.f32.gmra.mxu2 %vm394_vm5, %v463_v23  ;;  %1476 = vmatmul.msk.f32.gmra.mxu0 %vm394_vm5, %v463_v23 }
 0x144   : > { %1442 = vmatmul.msk.f32.gmra.mxu3 %vm394_vm5, %v612_v24 }
 0x148   : > { %v1803_v26 = vld [vmem:[#allocation2 + $0x71] sm:$0xff]  ;;  %v439_v30 = vpop.permute.xlu1 %438 }
 0x149   : > { %v464_v27 = vld [vmem:[#allocation2 + $0x70] sm:$0xff]  ;;  %456 = vst.msk [vmem:[#allocation2 + $0x81] sm:$0xff] %vm394_vm5, %v439_v30 }
 0x14a   : > { %v613_v28 = vld [vmem:[#allocation2 + $0x72] sm:$0xff]  ;;  %1426 = vmatmul.msk.f32.gmra.mxu1 %vm394_vm5, %v1803_v26 }
 0x14b   : > { %1434 = vmatmul.msk.f32.gmra.mxu2 %vm394_vm5, %v464_v27  ;;  %1477 = vmatmul.msk.f32.gmra.mxu0 %vm394_vm5, %v464_v27 }
 0x14c   : > { %1443 = vmatmul.msk.f32.gmra.mxu3 %vm394_vm5, %v613_v28 }
 0x150   : > { %v945_v31 = vld [vmem:[#allocation2 + $0x80] sm:$0xff] }
 0x151   : > { %v779_v33 = vld [vmem:[#allocation2 + $0x81] sm:$0xff] }
 0x152   : > { %1445 = vmatmul.msk.f32.vlgmr.msrb.gmra.mxu1 %vm394_vm5, %v1731_v0  ;;  %v862_v34 = vld [vmem:[#allocation2 + $0x82] sm:$0xff] }
 0x153   : > { %1454 = vmatmul.msk.f32.vlgmr.msrb.gmra.mxu2 %vm394_vm5, %v1729_v63  ;;  %1478 = vmatmul.msk.f32.gmra.mxu0 %vm394_vm5, %v945_v31  ;;  %v1112_v63 = vld [vmem:[#allocation2 + $0x92] sm:$0xff] }
 0x154   : > { %1463 = vmatmul.msk.f32.vlgmr.msrb.gmra.mxu3 %vm394_vm5, %v1733_v1 }
 0x15a   : > { %1446 = vmatmul.msk.f32.gmra.mxu1 %vm394_vm5, %v459_v5 }
 0x15b   : > { %1455 = vmatmul.msk.f32.gmra.mxu2 %vm394_vm5, %v1744_v4  ;;  %1479 = vmatmul.msk.f32.gmra.mxu0 %vm394_vm5, %v946_v32 }
 0x15c   : > { %1464 = vmatmul.msk.f32.gmra.mxu3 %vm394_vm5, %v1746_v6 }
 0x162   : > { %1447 = vmatmul.msk.f32.gmra.mxu1 %vm394_vm5, %v460_v9 }
 0x163   : > { %1456 = vmatmul.msk.f32.gmra.mxu2 %vm394_vm5, %v1756_v8 }
 0x164   : > { %1465 = vmatmul.msk.f32.gmra.mxu3 %vm394_vm5, %v1758_v10 }
 0x16a   : > { %1448 = vmatmul.msk.f32.gmra.mxu1 %vm394_vm5, %v461_v13 }
 0x16b   : > { %1457 = vmatmul.msk.f32.gmra.mxu2 %vm394_vm5, %v1769_v12 }
 0x16c   : > { %1466 = vmatmul.msk.f32.gmra.mxu3 %vm394_vm5, %v1771_v14 }
 0x172   : > { %1449 = vmatmul.msk.f32.gmra.mxu1 %vm394_vm5, %v462_v18 }
 0x173   : > { %1458 = vmatmul.msk.f32.gmra.mxu2 %vm394_vm5, %v1785_v17 }
 0x174   : > { %1467 = vmatmul.msk.f32.gmra.mxu3 %vm394_vm5, %v1790_v19 }
 0x17a   : > { %1450 = vmatmul.msk.f32.gmra.mxu1 %vm394_vm5, %v463_v23 }
 0x17b   : > { %1459 = vmatmul.msk.f32.gmra.mxu2 %vm394_vm5, %v1796_v22 }
 0x17c   : > { %1468 = vmatmul.msk.f32.gmra.mxu3 %vm394_vm5, %v612_v24 }
 0x182   : > { %1451 = vmatmul.msk.f32.gmra.mxu1 %vm394_vm5, %v464_v27 }
 0x183   : > { %1460 = vmatmul.msk.f32.gmra.mxu2 %vm394_vm5, %v1803_v26 }
 0x184   : > { %1469 = vmatmul.msk.f32.gmra.mxu3 %vm394_vm5, %v613_v28 }
 0x18a   : > { %1452 = vmatmul.msk.f32.gmra.mxu1 %vm394_vm5, %v945_v31 }
 0x18b   : > { %1461 = vmatmul.msk.f32.gmra.mxu2 %vm394_vm5, %v779_v33 }
 0x18c   : > { %1470 = vmatmul.msk.f32.gmra.mxu3 %vm394_vm5, %v862_v34 }
 0x192   : > { %1481 = vmatmul.msk.f32.vlgmr.msra.gmra.mxu1 %vm394_vm5, %v1744_v4 }
 0x193   : > { %1490 = vmatmul.msk.f32.vlgmr.msra.gmra.mxu2 %vm394_vm5, %v1746_v6 }
 0x196   : > { %v520_v36 = vpop.f32.mrf.mxu1 }
 0x19a   : > { %1482 = vmatmul.msk.f32.gmra.mxu1 %vm394_vm5, %v1756_v8 }
 0x19b   : > { %1491 = vmatmul.msk.f32.gmra.mxu2 %vm394_vm5, %v1758_v10 }
 0x19d   : > { %v585_v37 = vpop.f32.mrf.mxu2 }
 0x19e   : > { %v1858_v38 = vadd.f32 %v585_v37, %v520_v36  ;;  %v660_v52 = vpop.f32.mrf.mxu3 }
 0x19f   : > { %v523_v39 = vpop.f32.mrf.mxu1 }
 0x1a0   : > { %v682_v37 = vadd.f32 %v660_v52, %v1858_v38  ;;  %v1927_v38 = vld [vmem:[%s2015_s5 + $0x1] ss:$0 sm:$0xff] }
 0x1a2   : > { %1483 = vmatmul.msk.f32.gmra.mxu1 %vm394_vm5, %v1769_v12 }
 0x1a3   : > { %1492 = vmatmul.msk.f32.gmra.mxu2 %vm394_vm5, %v1771_v14 }
 0x1a6   : > { %v588_v40 = vpop.f32.mrf.mxu2 }
 0x1a7   : > { %v1864_v42 = vadd.f32 %v588_v40, %v523_v39  ;;  %v526_v43 = vpop.f32.mrf.mxu1  ;;  %v663_v58 = vpop.f32.mrf.mxu3 }
 0x1aa   : > { %1484 = vmatmul.msk.f32.gmra.mxu1 %vm394_vm5, %v1785_v17 }
 0x1ab   : > { %1493 = vmatmul.msk.f32.gmra.mxu2 %vm394_vm5, %v1790_v19 }
 0x1ae   : > { %v591_v44 = vpop.f32.mrf.mxu2 }
 0x1af   : > { %v1870_v46 = vadd.f32 %v591_v44, %v526_v43  ;;  %v529_v47 = vpop.f32.mrf.mxu1  ;;  %v666_v0 = vpop.f32.mrf.mxu3 }
 0x1b2   : > { %1485 = vmatmul.msk.f32.gmra.mxu1 %vm394_vm5, %v1796_v22 }
 0x1b3   : > { %1494 = vmatmul.msk.f32.gmra.mxu2 %vm394_vm5, %v612_v24 }
 0x1b6   : > { %v594_v48 = vpop.f32.mrf.mxu2 }
 0x1b7   : > { %v1875_v50 = vadd.f32 %v594_v48, %v529_v47  ;;  %v532_v51 = vpop.f32.mrf.mxu1  ;;  %v1893_v5 = vpop.f32.mrf.mxu3 }
 0x1ba   : > { %1486 = vmatmul.msk.f32.gmra.mxu1 %vm394_vm5, %v1803_v26  ;;  %v583_v26 = vadd.f32 %v582_v16, %v517_v11 }
 0x1bb   : > { %1495 = vmatmul.msk.f32.gmra.mxu2 %vm394_vm5, %v613_v28  ;;  %v990_v28 = vpop.f32.mrf.mxu0 }
 0x1bc   : > { %v681_v27 = vadd.f32 %v657_v20, %v583_v26  ;;  %v684_v20 = vadd.f32 %v666_v0, %v1870_v46  ;;  %v685_v46 = vadd.f32 %v1893_v5, %v1875_v50 }
 0x1be   : > { %v597_v54 = vpop.f32.mrf.mxu2 }
 0x1bf   : > { %v1880_v55 = vadd.f32 %v597_v54, %v532_v51  ;;  %v535_v56 = vpop.f32.mrf.mxu1  ;;  %v1895_v9 = vpop.f32.mrf.mxu3 }
 0x1c1   : > { %v686_v50 = vadd.f32 %v1895_v9, %v1880_v55 }
 0x1c2   : > { %1487 = vmatmul.msk.f32.gmra.mxu1 %vm394_vm5, %v779_v33 }
 0x1c3   : > { %1496 = vmatmul.msk.f32.gmra.mxu2 %vm394_vm5, %v862_v34  ;;  %v993_v40 = vpop.f32.mrf.mxu0 }
 0x1c6   : > { %v600_v59 = vpop.f32.mrf.mxu2 }
 0x1c7   : > { %v1887_v60 = vadd.f32 %v600_v59, %v535_v56  ;;  %v538_v61 = vpop.f32.mrf.mxu1  ;;  %v1897_v13 = vpop.f32.mrf.mxu3  ;;  %v1921_v56 = vld [vmem:[%s2015_s5] ss:$0 sm:$0xff]  ;;  %v683_v59 = vadd.f32 %v663_v58, %v1864_v42 }
 0x1c9   : > { %v687_v55 = vadd.f32 %v1897_v13, %v1887_v60 }
 0x1ca   : > { %1488 = vmatmul.msk.f32.gmra.mxu1 %vm394_vm5, %v1029_v62 }
 0x1cb   : > { %1497 = vmatmul.msk.f32.gmra.mxu2 %vm394_vm5, %v1112_v63 }
 0x1ce   : > { %v603_v1 = vpop.f32.mrf.mxu2 }
 0x1cf   : > { %v1891_v2 = vadd.f32 %v603_v1, %v538_v61  ;;  %v740_v3 = vpop.f32.mrf.mxu1  ;;  %v1901_v17 = vpop.f32.mrf.mxu3 }
 0x1d0   : > { %v764_v32 = vadd.f32 %v740_v3, %v681_v27  ;;  %v996_v3 = vpop.f32.mrf.mxu0 }
 0x1d1   : > { %v688_v60 = vadd.f32 %v1901_v17, %v1891_v2 }
 0x1d6   : > { %v823_v4 = vpop.f32.mrf.mxu2 }
 0x1d7   : > { %v743_v6 = vpop.f32.mrf.mxu1  ;;  %v906_v23 = vpop.f32.mrf.mxu3  ;;  %v847_v34 = vadd.f32 %v823_v4, %v764_v32 }
 0x1d8   : > { %v765_v44 = vadd.f32 %v743_v6, %v682_v37 }
 0x1d9   : > { %v930_v39 = vadd.f32 %v906_v23, %v847_v34  ;;  %v999_v34 = vpop.f32.mrf.mxu0 }
 0x1db   : > { %v1014_v48 = vadd.f32 %v990_v28, %v930_v39 }
 0x1de   : > { %v826_v7 = vpop.f32.mrf.mxu2 }
 0x1df   : > { %v746_v8 = vpop.f32.mrf.mxu1  ;;  %v909_v33 = vpop.f32.mrf.mxu3  ;;  %v848_v47 = vadd.f32 %v826_v7, %v765_v44 }
 0x1e0   : > { %v766_v63 = vadd.f32 %v746_v8, %v683_v59 }
 0x1e1   : > { %v931_v61 = vadd.f32 %v909_v33, %v848_v47 }
 0x1e3   : > { %v1015_v7 = vadd.f32 %v993_v40, %v931_v61  ;;  %v1002_v61 = vpop.f32.mrf.mxu0 }
 0x1e6   : > { %v829_v10 = vpop.f32.mrf.mxu2 }
 0x1e7   : > { %v749_v12 = vpop.f32.mrf.mxu1  ;;  %v912_v51 = vpop.f32.mrf.mxu3  ;;  %v849_v4 = vadd.f32 %v829_v10, %v766_v63 }
 0x1e8   : > { %v767_v8 = vadd.f32 %v749_v12, %v684_v20 }
 0x1e9   : > { %v932_v23 = vadd.f32 %v912_v51, %v849_v4 }
 0x1eb   : > { %v1016_v10 = vadd.f32 %v996_v3, %v932_v23 }
 0x1ee   : > { %v832_v14 = vpop.f32.mrf.mxu2 }
 0x1ef   : > { %v1899_v15 = vpop.f32.mrf.mxu1  ;;  %v915_v42 = vpop.f32.mrf.mxu3  ;;  %v850_v32 = vadd.f32 %v832_v14, %v767_v8 }
 0x1f0   : > { %v768_v47 = vadd.f32 %v1899_v15, %v685_v46 }
 0x1f1   : > { %v933_v0 = vadd.f32 %v915_v42, %v850_v32 }
 0x1f3   : > { %v1017_v51 = vadd.f32 %v999_v34, %v933_v0 }
 0x1f6   : > { %v1903_v18 = vpop.f32.mrf.mxu2 }
 0x1f7   : > { %v1905_v19 = vpop.f32.mrf.mxu1  ;;  %v918_v44 = vpop.f32.mrf.mxu3 }
 0x1f8   : > { %v769_v63 = vadd.f32 %v1905_v19, %v686_v50  ;;  %v1005_v19 = vpop.f32.mrf.mxu0 }
 0x1fe   : > { %v1907_v22 = vpop.f32.mrf.mxu2 }
 0x1ff   : > { %v1909_v24 = vpop.f32.mrf.mxu1  ;;  %v852_v3 = vadd.f32 %v1907_v22, %v769_v63  ;;  %v1530_v63 = vld [vmem:[%s2016_s6 + $0x1] ss:$0 sm:$0xff] }
 0x200   : > { %v770_v20 = vadd.f32 %v1909_v24, %v687_v55  ;;  %v1008_v24 = vpop.f32.mrf.mxu0 }
 0x206   : > { %v1911_v30 = vpop.f32.mrf.mxu2 }
 0x207   : > { %v1913_v31 = vpop.f32.mrf.mxu1  ;;  %v853_v23 = vadd.f32 %v1911_v30, %v770_v20 }
 0x20e   : > { %v1915_v36 = vpop.f32.mrf.mxu2 }
 0x20f   : > { %v1073_v43 = vpop.f32.mrf.mxu1 }
 0x210   : > { %v1097_v54 = vadd.f32 %v1073_v43, %v1014_v48  ;;  %v851_v48 = vadd.f32 %v1903_v18, %v768_v47  ;;  %v1011_v47 = vpop.f32.mrf.mxu0 }
 0x212   : > { %v934_v5 = vadd.f32 %v918_v44, %v851_v48 }
 0x214   : > { %v1018_v4 = vadd.f32 %v1002_v61, %v934_v5  ;;  %v1529_v5 = vld [vmem:[%s2016_s6] ss:$0 sm:$0xff] }
 0x216   : > { %v1156_v57 = vpop.f32.mrf.mxu2 }
 0x217   : > { %v1180_v62 = vadd.f32 %v1156_v57, %v1097_v54  ;;  %v1076_v52 = vpop.f32.mrf.mxu1 }
 0x218   : > { %v1098_v11 = vadd.f32 %v1076_v52, %v1015_v7 }
 0x219   : > { %v1192_v1 = vadd.f32 %v1921_v56, %v1180_v62 }
 0x21b   : > { %vm1200_vm11 = vcmp.ge.f32.partialorder %v1192_v1, 0.0  ;;  %v1213_v6 = vmul.f32 %v1927_v38, %v1192_v1 }
 0x21d   : > { %v1221_v16 = vsel %vm1200_vm11, %v1192_v1, %v1213_v6  ;;  %v921_v1 = vpop.f32.mrf.mxu3 }
 0x21e   : > { %v1159_v58 = vpop.f32.mrf.mxu2  ;;  %1499 = vmatmul.msk.f32.vlgmr.msra.gmra.mxu3 %vm394_vm5, %v1221_v16  ;;  %v935_v9 = vadd.f32 %v921_v1, %v852_v3 }
 0x21f   : > { %v1181_v26 = vadd.f32 %v1159_v58, %v1098_v11  ;;  %v1079_v27 = vpop.f32.mrf.mxu1 }
 0x220   : > { %v1099_v37 = vadd.f32 %v1079_v27, %v1016_v10 }
 0x221   : > { %v1193_v28 = vadd.f32 %v1921_v56, %v1181_v26  ;;  %v1019_v26 = vadd.f32 %v1005_v19, %v935_v9 }
 0x223   : > { %vm1201_vm12 = vcmp.ge.f32.partialorder %v1193_v28, 0.0  ;;  %v1214_v33 = vmul.f32 %v1927_v38, %v1193_v28 }
 0x225   : > { %v1222_v39 = vsel %vm1201_vm12, %v1193_v28, %v1214_v33  ;;  %v924_v8 = vpop.f32.mrf.mxu3 }
 0x226   : > { %v1162_v40 = vpop.f32.mrf.mxu2  ;;  %1500 = vmatmul.msk.f32.gmra.mxu3 %vm394_vm5, %v1222_v39  ;;  %v936_v13 = vadd.f32 %v924_v8, %v853_v23 }
 0x227   : > { %v1182_v43 = vadd.f32 %v1162_v40, %v1099_v37  ;;  %v1082_v12 = vpop.f32.mrf.mxu1  ;;  %v771_v37 = vadd.f32 %v1913_v31, %v688_v60 }
 0x228   : > { %v1100_v57 = vadd.f32 %v1082_v12, %v1017_v51  ;;  %v1020_v39 = vadd.f32 %v1008_v24, %v936_v13 }
 0x229   : > { %v1194_v14 = vadd.f32 %v1921_v56, %v1182_v43  ;;  %v854_v40 = vadd.f32 %v1915_v36, %v771_v37 }
 0x22b   : > { %vm1202_vm13 = vcmp.ge.f32.partialorder %v1194_v14, 0.0  ;;  %v1215_v54 = vmul.f32 %v1927_v38, %v1194_v14 }
 0x22d   : > { %v1223_v59 = vsel %vm1202_vm13, %v1194_v14, %v1215_v54  ;;  %v927_v44 = vpop.f32.mrf.mxu3 }
 0x22e   : > { %v1165_v62 = vpop.f32.mrf.mxu2  ;;  %1501 = vmatmul.msk.f32.gmra.mxu3 %vm394_vm5, %v1223_v59  ;;  %v937_v2 = vadd.f32 %v927_v44, %v854_v40 }
 0x22f   : > { %v1183_v52 = vadd.f32 %v1165_v62, %v1100_v57  ;;  %v1085_v15 = vpop.f32.mrf.mxu1 }
 0x230   : > { %v1101_v7 = vadd.f32 %v1085_v15, %v1018_v4  ;;  %v1021_v48 = vadd.f32 %v1011_v47, %v937_v2 }
 0x231   : > { %v1195_v18 = vadd.f32 %v1921_v56, %v1183_v52 }
 0x233   : > { %vm1203_vm14 = vcmp.ge.f32.partialorder %v1195_v18, 0.0  ;;  %v1216_v6 = vmul.f32 %v1927_v38, %v1195_v18 }
 0x235   : > { %v1224_v11 = vsel %vm1203_vm14, %v1195_v18, %v1216_v6 }
 0x236   : > { %v1168_v16 = vpop.f32.mrf.mxu2  ;;  %1502 = vmatmul.msk.f32.gmra.mxu3 %vm394_vm5, %v1224_v11 }
 0x237   : > { %v1184_v42 = vadd.f32 %v1168_v16, %v1101_v7  ;;  %v1088_v58 = vpop.f32.mrf.mxu1 }
 0x238   : > { %v1102_v28 = vadd.f32 %v1088_v58, %v1019_v26 }
 0x239   : > { %v1196_v22 = vadd.f32 %v1921_v56, %v1184_v42 }
 0x23b   : > { %vm1204_vm15 = vcmp.ge.f32.partialorder %v1196_v22, 0.0  ;;  %v1217_v27 = vmul.f32 %v1927_v38, %v1196_v22 }
 0x23d   : > { %v1225_v32 = vsel %vm1204_vm15, %v1196_v22, %v1217_v27 }
 0x23e   : > { %v1171_v10 = vpop.f32.mrf.mxu2  ;;  %1503 = vmatmul.msk.f32.gmra.mxu3 %vm394_vm5, %v1225_v32 }
 0x23f   : > { %v1185_v33 = vadd.f32 %v1171_v10, %v1102_v28  ;;  %v1091_v34 = vpop.f32.mrf.mxu1 }
 0x240   : > { %v1103_v0 = vadd.f32 %v1091_v34, %v1020_v39 }
 0x241   : > { %v1197_v30 = vadd.f32 %v1921_v56, %v1185_v33 }
 0x243   : > { %vm1205_vm0 = vcmp.ge.f32.partialorder %v1197_v30, 0.0  ;;  %v1218_v46 = vmul.f32 %v1927_v38, %v1197_v30 }
 0x245   : > { %v1226_v43 = vsel %vm1205_vm0, %v1197_v30, %v1218_v46 }
 0x246   : > { %v1174_v12 = vpop.f32.mrf.mxu2  ;;  %1504 = vmatmul.msk.f32.gmra.mxu3 %vm394_vm5, %v1226_v43 }
 0x247   : > { %v1186_v17 = vadd.f32 %v1174_v12, %v1103_v0  ;;  %v1094_v31 = vpop.f32.mrf.mxu1 }
 0x248   : > { %v1104_v36 = vadd.f32 %v1094_v31, %v1021_v48 }
 0x249   : > { %v1198_v14 = vadd.f32 %v1921_v56, %v1186_v17 }
 0x24b   : > { %vm1206_vm1 = vcmp.ge.f32.partialorder %v1198_v14, 0.0  ;;  %v1219_v51 = vmul.f32 %v1927_v38, %v1198_v14 }
 0x24d   : > { %v1227_v54 = vsel %vm1206_vm1, %v1198_v14, %v1219_v51 }
 0x24e   : > { %v1177_v57 = vpop.f32.mrf.mxu2  ;;  %1505 = vmatmul.msk.f32.gmra.mxu3 %vm394_vm5, %v1227_v54 }
 0x24f   : > { %v1187_v59 = vadd.f32 %v1177_v57, %v1104_v36 }
 0x251   : > { %v1199_v61 = vadd.f32 %v1921_v56, %v1187_v59 }
 0x253   : > { %vm1207_vm2 = vcmp.ge.f32.partialorder %v1199_v61, 0.0  ;;  %v1220_v62 = vmul.f32 %v1927_v38, %v1199_v61 }
 0x255   : > { %v1228_v50 = vsel %vm1207_vm2, %v1199_v61, %v1220_v62 }
 0x256   : > { %1506 = vmatmul.msk.f32.gmra.mxu3 %vm394_vm5, %v1228_v50 }
 0x2a1   : > { %v1275_v52 = vpop.f32.mrf.mxu3 }
 0x2a2   : > { %v1276_v15 = vadd.f32 %v1529_v5, %v1275_v52 }
 0x2a4   : > { %v1299_v18 = vadd.f32 %v1276_v15, %v1641_v21 }
 0x2a6   : > { %vm1307_vm3 = vcmp.ge.f32.partialorder %v1299_v18, 0.0  ;;  %v1320_v56 = vmul.f32 %v1530_v63, %v1299_v18 }
 0x2a8   : > { %v1328_v38 = vsel %vm1307_vm3, %v1299_v18, %v1320_v56 }
 0x2a9   : > { %1337 = vst.msk [vmem:[%s1982_s18] sm:$0xff] %vm1336_vm4, %v1328_v38  ;;  %v1278_v1 = vpop.f32.mrf.mxu3 }
 0x2aa   : > { %v1279_v3 = vadd.f32 %v1529_v5, %v1278_v1 }
 0x2ac   : > { %v1300_v4 = vadd.f32 %v1279_v3, %v1647_v25 }
 0x2ae   : > { %vm1308_vm5 = vcmp.ge.f32.partialorder %v1300_v4, 0.0  ;;  %v1321_v21 = vmul.f32 %v1530_v63, %v1300_v4 }
 0x2b0   : > { %v1329_v6 = vsel %vm1308_vm5, %v1300_v4, %v1321_v21 }
 0x2b1   : > { %1338 = vst.msk [vmem:[%s1982_s18 + $0x8] sm:$0xff] %vm1336_vm4, %v1329_v6  ;;  %v1281_v7 = vpop.f32.mrf.mxu3 }
 0x2b2   : > { %v1282_v11 = vadd.f32 %v1529_v5, %v1281_v7 }
 0x2b4   : > { %v1301_v16 = vadd.f32 %v1282_v11, %v1653_v29 }
 0x2b6   : > { %vm1309_vm6 = vcmp.ge.f32.partialorder %v1301_v16, 0.0  ;;  %v1322_v55 = vmul.f32 %v1530_v63, %v1301_v16 }
 0x2b8   : > { %v1330_v9 = vsel %vm1309_vm6, %v1301_v16, %v1322_v55 }
 0x2b9   : > { %1339 = vst.msk [vmem:[%s1982_s18 + $0x10] sm:$0xff] %vm1336_vm4, %v1330_v9  ;;  %v1284_v42 = vpop.f32.mrf.mxu3 }
 0x2ba   : > { %v1285_v19 = vadd.f32 %v1529_v5, %v1284_v42 }
 0x2bc   : > { %v1302_v25 = vadd.f32 %v1285_v19, %v1663_v35 }
 0x2be   : > { %vm1310_vm7 = vcmp.ge.f32.partialorder %v1302_v25, 0.0  ;;  %v1323_v58 = vmul.f32 %v1530_v63, %v1302_v25 }
 0x2c0   : > { %v1331_v20 = vsel %vm1310_vm7, %v1302_v25, %v1323_v58 }
 0x2c1   : > { %1340 = vst.msk [vmem:[%s1982_s18 + $0x18] sm:$0xff] %vm1336_vm4, %v1331_v20  ;;  %v1287_v22 = vpop.f32.mrf.mxu3 }
 0x2c2   : > { %v1288_v23 = vadd.f32 %v1529_v5, %v1287_v22 }
 0x2c4   : > { %v1303_v29 = vadd.f32 %v1288_v23, %v1680_v41 }
 0x2c6   : > { %vm1311_vm8 = vcmp.ge.f32.partialorder %v1303_v29, 0.0  ;;  %v1324_v26 = vmul.f32 %v1530_v63, %v1303_v29 }
 0x2c8   : > { %v1332_v27 = vsel %vm1311_vm8, %v1303_v29, %v1324_v26 }
 0x2c9   : > { %1341 = vst.msk [vmem:[%s1982_s18 + $0x20] sm:$0xff] %vm1336_vm4, %v1332_v27  ;;  %v1290_v8 = vpop.f32.mrf.mxu3 }
 0x2ca   : > { %v1291_v28 = vadd.f32 %v1529_v5, %v1290_v8 }
 0x2cc   : > { %v1304_v35 = vadd.f32 %v1291_v28, %v1695_v45 }
 0x2ce   : > { %vm1312_vm9 = vcmp.ge.f32.partialorder %v1304_v35, 0.0  ;;  %v1325_v32 = vmul.f32 %v1530_v63, %v1304_v35 }
 0x2d0   : > { %v1333_v10 = vsel %vm1312_vm9, %v1304_v35, %v1325_v32 }
 0x2d1   : > { %1342 = vst.msk [vmem:[%s1982_s18 + $0x28] sm:$0xff] %vm1336_vm4, %v1333_v10  ;;  %v1293_v60 = vpop.f32.mrf.mxu3 }
 0x2d2   : > { %v1294_v13 = vadd.f32 %v1529_v5, %v1293_v60 }
 0x2d4   : > { %v1305_v41 = vadd.f32 %v1294_v13, %v1704_v49 }
 0x2d6   : > { %vm1313_vm10 = vcmp.ge.f32.partialorder %v1305_v41, 0.0  ;;  %v1326_v33 = vmul.f32 %v1530_v63, %v1305_v41 }
 0x2d8   : > { %v1334_v24 = vsel %vm1313_vm10, %v1305_v41, %v1326_v33 }
 0x2d9   : > { %1343 = vst.msk [vmem:[%s1982_s18 + $0x30] sm:$0xff] %vm1336_vm4, %v1334_v24  ;;  %v1296_v34 = vpop.f32.mrf.mxu3 }
 0x2da   : > { %v1297_v37 = vadd.f32 %v1529_v5, %v1296_v34 }
 0x2dc   : > { %v1306_v30 = vadd.f32 %v1297_v37, %v1710_v53 }
 0x2de   : > { %vm1314_vm11 = vcmp.ge.f32.partialorder %v1306_v30, 0.0  ;;  %v1327_v45 = vmul.f32 %v1530_v63, %v1306_v30 }
 0x2e0   : > { %v1335_v39 = vsel %vm1314_vm11, %v1306_v30, %v1327_v45 }
 0x2e1   : > { %1344 = vst.msk [vmem:[%s1982_s18 + $0x38] sm:$0xff] %vm1336_vm4, %v1335_v39 }
 0x2e2 PF: > { %s17_s24 = sadd.s32 1, %s1537_s24  }
 0x2e3   : > { %p14_p4 = scmp.ge.s32.totalorder %s17_s24, 4  }
 0x2e5   :  { %16 = sbr.rel (!%p14_p4) target bundleno = 1 (0x1), region = 91 }

</bundles_post_ra>
